<compile_context>
chip_gen: v6e
topology: v6e:2x2x1
jax: 0.10.0
libtpu: 0.0.40
codegen_flags: <defaults>
</compile_context>

<pallas_src>
from functools import partial

import jax
import jax.numpy as jnp
from jax.experimental import pallas as pl
from jax.experimental.pallas import tpu as pltpu


def _pick_tile_h(h):
    """Largest row tile <= 32 that divides H (multiple of 8 for halo blocks)."""
    for th in (32, 16, 8):
        if h % th == 0:
            return th
    return h


# ----------------------------------------------------------------------------
# 3x3 conv (pad=1) + folded BN affine + optional ReLU
# ----------------------------------------------------------------------------
def conv3x3_bn_relu_kernel(xa_ref, xm_ref, xb_ref, w_ref, scale_ref, shift_ref,
                           o_ref, *, apply_relu):
    """One (batch, row-tile) grid step.

    xa_ref:    (1, 8, W, Cin)   8-row block just above the tile (row 7 used)
    xm_ref:    (1, TH, W, Cin)  main row band
    xb_ref:    (1, 8, W, Cin)   8-row block just below the tile (row 0 used)
    w_ref:     (9, Cin, Cout)   flattened 3x3 HWIO weights, bf16
    scale_ref: (1, Cout)        folded BN scale (f32)
    shift_ref: (1, Cout)        folded BN shift + conv bias (f32)
    o_ref:     (1, TH, W, Cout)
    """
    TH = o_ref.shape[1]
    W = o_ref.shape[2]
    Cout = o_ref.shape[3]
    Cin = xm_ref.shape[3]
    nwin = (TH + 2) * W

    i = pl.program_id(1)
    last = pl.num_programs(1) - 1

    # (TH+2, W, Cin) window with one halo row above/below; image borders -> 0.
    xm = xm_ref[0].astype(jnp.float32)
    top = jnp.where(i == 0, 0.0, xa_ref[0, 7:8].astype(jnp.float32))
    bot = jnp.where(i == last, 0.0, xb_ref[0, 0:1].astype(jnp.float32))
    win = jnp.concatenate([top, xm, bot], axis=0).reshape(nwin, Cin)

    # Column-shifted variants (zero-padded conv boundary): XLU roll + mask
    # instead of unaligned sublane slices.
    pos = jax.lax.broadcasted_iota(jnp.int32, (nwin, 1), 0)
    first_col = (pos % W) == 0
    last_col = (pos % W) == (W - 1)
    x_l = jnp.where(first_col, 0.0, pltpu.roll(win, 1, axis=0))         # x[., w-1]
    x_r = jnp.where(last_col, 0.0, pltpu.roll(win, nwin - 1, axis=0))   # x[., w+1]

    variants = (x_l.astype(jnp.bfloat16),   # dx = 0
                win.astype(jnp.bfloat16),   # dx = 1
                x_r.astype(jnp.bfloat16))   # dx = 2

    acc = jnp.zeros((TH * W, Cout), jnp.float32)
    for dx, xs in enumerate(variants):
        for dy in range(3):
            patch = xs[dy * W:(dy + TH) * W]        # aligned (multiple-of-8) slice
            acc = acc + jnp.dot(patch, w_ref[dy * 3 + dx],
                                preferred_element_type=jnp.float32)

    y = acc * scale_ref[...] + shift_ref[...]
    if apply_relu:
        y = jnp.maximum(y, 0.0)
    o_ref[...] = y.reshape(1, TH, W, Cout)


def conv3x3(x_nhwc, w9, scale, shift, *, relu):
    N, H, W, Cin = x_nhwc.shape
    Cout = w9.shape[-1]
    assert H % 8 == 0 and W % 8 == 0, (H, W)
    TH = _pick_tile_h(H)
    th8 = TH // 8
    n_h = H // TH
    hblk = H // 8

    kernel = partial(conv3x3_bn_relu_kernel, apply_relu=relu)
    return pl.pallas_call(
        kernel,
        out_shape=jax.ShapeDtypeStruct((N, H, W, Cout), jnp.float32),
        grid=(N, n_h),
        in_specs=[
            pl.BlockSpec((1, 8, W, Cin),
                         lambda n, i: (n, jnp.maximum(i * th8 - 1, 0), 0, 0)),
            pl.BlockSpec((1, TH, W, Cin), lambda n, i: (n, i, 0, 0)),
            pl.BlockSpec((1, 8, W, Cin),
                         lambda n, i: (n, jnp.minimum((i + 1) * th8, hblk - 1), 0, 0)),
            # constant block index -> fetched once, stays resident across tiles
            pl.BlockSpec((9, Cin, Cout), lambda n, i: (0, 0, 0)),
            pl.BlockSpec((1, Cout), lambda n, i: (0, 0)),
            pl.BlockSpec((1, Cout), lambda n, i: (0, 0)),
        ],
        out_specs=pl.BlockSpec((1, TH, W, Cout), lambda n, i: (n, i, 0, 0)),
        compiler_params=pltpu.CompilerParams(
            dimension_semantics=("parallel", "parallel")),
    )(x_nhwc, x_nhwc, x_nhwc, w9, scale, shift)


# ----------------------------------------------------------------------------
# Bilinear 2x upsample (align_corners=False), 4 parity phases, row-tiled
# ----------------------------------------------------------------------------
def upsample2x_kernel(xa_ref, xm_ref, xb_ref, o_ref):
    """out phase k = 2*row_parity + col_parity.   o_ref: (1, 4, TH, W, C)."""
    TH = xm_ref.shape[1]
    W = xm_ref.shape[2]
    C = xm_ref.shape[3]
    i = pl.program_id(1)
    last = pl.num_programs(1) - 1

    xm = xm_ref[0].astype(jnp.float32)
    # Clamped (not zero) halo rows for bilinear edge handling.
    top = jnp.where(i == 0, xm[0:1], xa_ref[0, 7:8].astype(jnp.float32))
    bot = jnp.where(i == last, xm[TH - 1:TH], xb_ref[0, 0:1].astype(jnp.float32))
    win = jnp.concatenate([top, xm, bot], axis=0).reshape((TH + 2) * W, C)

    x = win[W:(TH + 1) * W]           # current rows
    x_up = win[0:TH * W]              # row above (clamped)
    x_dn = win[2 * W:(TH + 2) * W]    # row below (clamped)
    row_e = 0.25 * x_up + 0.75 * x    # even output rows
    row_o = 0.75 * x + 0.25 * x_dn    # odd output rows

    pos = jax.lax.broadcasted_iota(jnp.int32, (TH * W, 1), 0)
    first_col = (pos % W) == 0
    last_col = (pos % W) == (W - 1)

    def wblend(r):
        r_l = jnp.where(first_col, r, pltpu.roll(r, 1, axis=0))           # clamp left
        r_r = jnp.where(last_col, r, pltpu.roll(r, TH * W - 1, axis=0))   # clamp right
        return 0.25 * r_l + 0.75 * r, 0.75 * r + 0.25 * r_r

    ee, eo = wblend(row_e)
    oe, oo = wblend(row_o)
    o_ref[0, 0] = ee.reshape(TH, W, C)
    o_ref[0, 1] = eo.reshape(TH, W, C)
    o_ref[0, 2] = oe.reshape(TH, W, C)
    o_ref[0, 3] = oo.reshape(TH, W, C)


def upsample2x(x_nhwc):
    N, H, W, C = x_nhwc.shape
    assert H % 8 == 0 and W % 8 == 0, (H, W)
    TH = _pick_tile_h(H)
    th8 = TH // 8
    n_h = H // TH
    hblk = H // 8

    phases = pl.pallas_call(
        upsample2x_kernel,
        out_shape=jax.ShapeDtypeStruct((N, 4, H, W, C), jnp.float32),
        grid=(N, n_h),
        in_specs=[
            pl.BlockSpec((1, 8, W, C),
                         lambda n, i: (n, jnp.maximum(i * th8 - 1, 0), 0, 0)),
            pl.BlockSpec((1, TH, W, C), lambda n, i: (n, i, 0, 0)),
            pl.BlockSpec((1, 8, W, C),
                         lambda n, i: (n, jnp.minimum((i + 1) * th8, hblk - 1), 0, 0)),
        ],
        out_specs=pl.BlockSpec((1, 4, TH, W, C), lambda n, i: (n, 0, i, 0, 0)),
        compiler_params=pltpu.CompilerParams(
            dimension_semantics=("parallel", "parallel")),
    )(x_nhwc, x_nhwc, x_nhwc)

    # Interleave phases: out[n, 2h+a, 2w+b, c] = phases[n, 2a+b, h, w, c]
    out = phases.reshape(N, 2, 2, H, W, C)
    out = out.transpose(0, 3, 1, 4, 2, 5).reshape(N, 2 * H, 2 * W, C)
    return out


# ----------------------------------------------------------------------------
# RefUnet forward (NCHW in / NCHW out)
# ----------------------------------------------------------------------------
def ref_unet_forward(x_nchw, params):
    x = jnp.transpose(x_nchw, (0, 2, 3, 1))                 # NCHW -> NHWC
    hx = conv3x3(x, *params["conv0"], relu=False)           # conv0
    hx1 = conv3x3(hx, *params["conv1"], relu=True)          # conv1 + bn1 + relu1
    hx5 = conv3x3(hx1, *params["conv5"], relu=True)         # conv5 + bn5 + relu5
    hx = upsample2x(hx5)                                     # upscore2
    d4 = conv3x3(hx, *params["conv_d4"], relu=True)
    hx = upsample2x(d4)
    d3 = conv3x3(hx, *params["conv_d3"], relu=True)
    hx = upsample2x(d3)
    d1 = conv3x3(hx, *params["conv_d1"], relu=True)
    residual = conv3x3(d1, *params["conv_d0"], relu=False)  # conv_d0
    return jnp.transpose(residual, (0, 3, 1, 2))             # NHWC -> NCHW


# ----------------------------------------------------------------------------
# Deterministic synthetic parameters (BN folded into scale/shift)
# ----------------------------------------------------------------------------
def make_conv_params(key, cin, cout, with_bn):
    kw, kb, kg, kbt, km, kv = jax.random.split(key, 6)
    w = 0.1 * jax.random.normal(kw, (3, 3, cin, cout), jnp.float32)   # HWIO
    b = 0.02 * jax.random.normal(kb, (cout,), jnp.float32)
    if with_bn:
        eps = 1e-5
        gamma = 1.0 + 0.1 * jax.random.normal(kg, (cout,), jnp.float32)
        beta = 0.02 * jax.random.normal(kbt, (cout,), jnp.float32)
        mean = 0.02 * jax.random.normal(km, (cout,), jnp.float32)
        var = 1.0 + jnp.abs(0.1 * jax.random.normal(kv, (cout,), jnp.float32))
        scale = gamma / jnp.sqrt(var + eps)
        shift = beta + (b - mean) * scale
    else:
        scale = jnp.ones((cout,), jnp.float32)
        shift = b
    return (w.reshape(9, cin, cout).astype(jnp.bfloat16),   # bf16 MXU operand
            scale.reshape(1, cout),
            shift.reshape(1, cout))


if __name__ == "__main__":
    key = jax.random.PRNGKey(0)
    in_ch, inc_ch = 3, 8
    N, H, W = 2, 8, 8

    keys = jax.random.split(key, 8)
    params = {
        "conv0":   make_conv_params(keys[0], in_ch, inc_ch, False),
        "conv1":   make_conv_params(keys[1], inc_ch, 64, True),
        "conv5":   make_conv_params(keys[2], 64, 64, True),
        "conv_d4": make_conv_params(keys[3], 64, 64, True),
        "conv_d3": make_conv_params(keys[4], 64, 64, True),
        "conv_d1": make_conv_params(keys[5], 64, 64, True),
        "conv_d0": make_conv_params(keys[6], 64, 1, False),
    }

    x = jax.random.normal(keys[7], (N, in_ch, H, W), jnp.float32)  # NCHW input

    out = ref_unet_forward(x, params)
    out = jax.block_until_ready(out)
    assert out.shape == (N, 1, 8 * H, 8 * W), out.shape
    assert jnp.all(jnp.isfinite(out))
    print("KERNEL_OK")
</pallas_src>

<mosaic_0001>
module attributes {stable_mosaic.version = 11 : i64} {
  func.func @conv3x3_bn_relu_kernel(%arg0: i32, %arg1: i32, %arg2: memref<1x8x8x3xf32, #tpu.memory_space<vmem>>, %arg3: memref<1x8x8x3xf32, #tpu.memory_space<vmem>>, %arg4: memref<1x8x8x3xf32, #tpu.memory_space<vmem>>, %arg5: memref<9x3x8xbf16, #tpu.memory_space<vmem>>, %arg6: memref<1x8xf32, #tpu.memory_space<vmem>>, %arg7: memref<1x8xf32, #tpu.memory_space<vmem>>, %arg8: memref<1x8x8x8xf32, #tpu.memory_space<vmem>>) attributes {dimension_semantics = [#tpu.dimension_semantics<parallel>, #tpu.dimension_semantics<parallel>], iteration_bounds = array<i64: 2, 1>, scalar_prefetch = 0 : i64, scratch_operands = 0 : i64, tpu.core_type = #tpu.core_type<tc>, window_params = [{transform_indices = @transform_0, window_bounds = array<i64: 1, 8, 8, 3>}, {transform_indices = @transform_1, window_bounds = array<i64: 1, 8, 8, 3>}, {transform_indices = @transform_2, window_bounds = array<i64: 1, 8, 8, 3>}, {pipeline_mode = #tpu.pipeline_mode<synchronous>, transform_indices = @transform_3, window_bounds = array<i64: 9, 3, 8>}, {pipeline_mode = #tpu.pipeline_mode<synchronous>, transform_indices = @transform_4, window_bounds = array<i64: 1, 8>}, {pipeline_mode = #tpu.pipeline_mode<synchronous>, transform_indices = @transform_5, window_bounds = array<i64: 1, 8>}, {transform_indices = @transform_6, window_bounds = array<i64: 1, 8, 8, 8>}]} {
    %c0 = arith.constant 0 : index
    %c0_0 = arith.constant 0 : index
    %c0_1 = arith.constant 0 : index
    %c0_2 = arith.constant 0 : index
    %0 = vector.load %arg3[%c0, %c0_0, %c0_1, %c0_2] : memref<1x8x8x3xf32, #tpu.memory_space<vmem>>, vector<1x8x8x3xf32>
    %1 = vector.shape_cast %0 : vector<1x8x8x3xf32> to vector<8x8x3xf32>
    %c0_i32 = arith.constant 0 : i32
    %2 = arith.cmpi eq, %arg1, %c0_i32 : i32
    %c0_3 = arith.constant 0 : index
    %c7 = arith.constant 7 : index
    %c0_4 = arith.constant 0 : index
    %c0_5 = arith.constant 0 : index
    %3 = vector.load %arg2[%c0_3, %c7, %c0_4, %c0_5] : memref<1x8x8x3xf32, #tpu.memory_space<vmem>>, vector<1x1x8x3xf32>
    %4 = vector.shape_cast %3 : vector<1x1x8x3xf32> to vector<1x8x3xf32>
    %cst = arith.constant 0.000000e+00 : f32
    %5 = vector.broadcast %cst : f32 to vector<1x8x3xf32>
    %6 = arith.select %2, %5, %4 : vector<1x8x3xf32>
    %c0_i32_6 = arith.constant 0 : i32
    %7 = arith.cmpi eq, %arg1, %c0_i32_6 : i32
    %c0_7 = arith.constant 0 : index
    %c0_8 = arith.constant 0 : index
    %c0_9 = arith.constant 0 : index
    %c0_10 = arith.constant 0 : index
    %8 = vector.load %arg4[%c0_7, %c0_8, %c0_9, %c0_10] : memref<1x8x8x3xf32, #tpu.memory_space<vmem>>, vector<1x1x8x3xf32>
    %9 = vector.shape_cast %8 : vector<1x1x8x3xf32> to vector<1x8x3xf32>
    %cst_11 = arith.constant 0.000000e+00 : f32
    %10 = vector.broadcast %cst_11 : f32 to vector<1x8x3xf32>
    %11 = arith.select %7, %10, %9 : vector<1x8x3xf32>
    %12 = tpu.concatenate %6, %1, %11 in 0 : vector<1x8x3xf32>, vector<8x8x3xf32>, vector<1x8x3xf32> -> vector<10x8x3xf32>
    %13 = vector.shape_cast %12 : vector<10x8x3xf32> to vector<80x3xf32>
    %14 = tpu.iota {dimensions = array<i32: 0>} : vector<80x1xi32>
    %c8_i32 = arith.constant 8 : i32
    %c0_i32_12 = arith.constant 0 : i32
    %15 = arith.cmpi eq, %c8_i32, %c0_i32_12 : i32
    %c1_i32 = arith.constant 1 : i32
    %16 = arith.select %15, %c1_i32, %c8_i32 : i32
    %17 = vector.broadcast %16 : i32 to vector<80x1xi32>
    %18 = arith.remsi %14, %17 : vector<80x1xi32>
    %c0_i32_13 = arith.constant 0 : i32
    %19 = vector.broadcast %c0_i32_13 : i32 to vector<80x1xi32>
    %20 = arith.cmpi ne, %18, %19 : vector<80x1xi32>
    %c0_i32_14 = arith.constant 0 : i32
    %21 = vector.broadcast %c0_i32_14 : i32 to vector<80x1xi32>
    %22 = arith.cmpi slt, %18, %21 : vector<80x1xi32>
    %c0_i32_15 = arith.constant 0 : i32
    %23 = arith.cmpi slt, %16, %c0_i32_15 : i32
    %24 = vector.broadcast %23 : i1 to vector<80x1xi1>
    %25 = vector.broadcast %24 : vector<80x1xi1> to vector<80x1xi1>
    %26 = arith.xori %22, %25 : vector<80x1xi1>
    %27 = arith.andi %26, %20 : vector<80x1xi1>
    %28 = vector.broadcast %16 : i32 to vector<80x1xi32>
    %29 = arith.addi %18, %28 : vector<80x1xi32>
    %30 = arith.select %27, %29, %18 : vector<80x1xi1>, vector<80x1xi32>
    %c0_i32_16 = arith.constant 0 : i32
    %31 = vector.broadcast %c0_i32_16 : i32 to vector<80x1xi32>
    %32 = arith.cmpi eq, %30, %31 : vector<80x1xi32>
    %c8_i32_17 = arith.constant 8 : i32
    %c0_i32_18 = arith.constant 0 : i32
    %33 = arith.cmpi eq, %c8_i32_17, %c0_i32_18 : i32
    %c1_i32_19 = arith.constant 1 : i32
    %34 = arith.select %33, %c1_i32_19, %c8_i32_17 : i32
    %35 = vector.broadcast %34 : i32 to vector<80x1xi32>
    %36 = arith.remsi %14, %35 : vector<80x1xi32>
    %c0_i32_20 = arith.constant 0 : i32
    %37 = vector.broadcast %c0_i32_20 : i32 to vector<80x1xi32>
    %38 = arith.cmpi ne, %36, %37 : vector<80x1xi32>
    %c0_i32_21 = arith.constant 0 : i32
    %39 = vector.broadcast %c0_i32_21 : i32 to vector<80x1xi32>
    %40 = arith.cmpi slt, %36, %39 : vector<80x1xi32>
    %c0_i32_22 = arith.constant 0 : i32
    %41 = arith.cmpi slt, %34, %c0_i32_22 : i32
    %42 = vector.broadcast %41 : i1 to vector<80x1xi1>
    %43 = vector.broadcast %42 : vector<80x1xi1> to vector<80x1xi1>
    %44 = arith.xori %40, %43 : vector<80x1xi1>
    %45 = arith.andi %44, %38 : vector<80x1xi1>
    %46 = vector.broadcast %34 : i32 to vector<80x1xi32>
    %47 = arith.addi %36, %46 : vector<80x1xi32>
    %48 = arith.select %45, %47, %36 : vector<80x1xi1>, vector<80x1xi32>
    %c7_i32 = arith.constant 7 : i32
    %49 = vector.broadcast %c7_i32 : i32 to vector<80x1xi32>
    %50 = arith.cmpi eq, %48, %49 : vector<80x1xi32>
    %c1_i32_23 = arith.constant 1 : i32
    %51 = tpu.dynamic_rotate %13 by %c1_i32_23 dim 0 : vector<80x3xf32>, i32 -> vector<80x3xf32>
    %cst_24 = arith.constant 0.000000e+00 : f32
    %52 = vector.shape_cast %32 : vector<80x1xi1> to vector<80x1xi1>
    %53 = vector.broadcast %52 : vector<80x1xi1> to vector<80x3xi1>
    %54 = vector.broadcast %cst_24 : f32 to vector<80x3xf32>
    %55 = arith.select %53, %54, %51 : vector<80x3xi1>, vector<80x3xf32>
    %c79_i32 = arith.constant 79 : i32
    %56 = tpu.dynamic_rotate %13 by %c79_i32 dim 0 : vector<80x3xf32>, i32 -> vector<80x3xf32>
    %cst_25 = arith.constant 0.000000e+00 : f32
    %57 = vector.shape_cast %50 : vector<80x1xi1> to vector<80x1xi1>
    %58 = vector.broadcast %57 : vector<80x1xi1> to vector<80x3xi1>
    %59 = vector.broadcast %cst_25 : f32 to vector<80x3xf32>
    %60 = arith.select %58, %59, %56 : vector<80x3xi1>, vector<80x3xf32>
    %61 = arith.truncf %55 : vector<80x3xf32> to vector<80x3xbf16>
    %62 = arith.truncf %13 : vector<80x3xf32> to vector<80x3xbf16>
    %63 = arith.truncf %60 : vector<80x3xf32> to vector<80x3xbf16>
    %cst_26 = arith.constant 0.000000e+00 : f32
    %64 = vector.broadcast %cst_26 : f32 to vector<64x8xf32>
    %65 = vector.extract_strided_slice %61 {offsets = [0, 0], sizes = [64, 3], strides = [1, 1]} : vector<80x3xbf16> to vector<64x3xbf16>
    %c0_27 = arith.constant 0 : index
    %c0_28 = arith.constant 0 : index
    %c0_29 = arith.constant 0 : index
    %66 = vector.load %arg5[%c0_27, %c0_28, %c0_29] : memref<9x3x8xbf16, #tpu.memory_space<vmem>>, vector<1x3x8xbf16>
    %67 = vector.shape_cast %66 : vector<1x3x8xbf16> to vector<3x8xbf16>
    %cst_30 = arith.constant dense<0.000000e+00> : vector<64x8xf32>
    %68 = tpu.matmul %65, %67, %cst_30 {dimension_numbers = #tpu.dot_dimension_numbers<[1], [0], [0], [1], [0, 0, 1, 1], [], []>} : vector<64x3xbf16>, vector<3x8xbf16>, vector<64x8xf32> -> vector<64x8xf32>
    %69 = arith.addf %64, %68 : vector<64x8xf32>
    %70 = vector.extract_strided_slice %61 {offsets = [8, 0], sizes = [64, 3], strides = [1, 1]} : vector<80x3xbf16> to vector<64x3xbf16>
    %c3 = arith.constant 3 : index
    %c0_31 = arith.constant 0 : index
    %c0_32 = arith.constant 0 : index
    %71 = vector.load %arg5[%c3, %c0_31, %c0_32] : memref<9x3x8xbf16, #tpu.memory_space<vmem>>, vector<1x3x8xbf16>
    %72 = vector.shape_cast %71 : vector<1x3x8xbf16> to vector<3x8xbf16>
    %cst_33 = arith.constant dense<0.000000e+00> : vector<64x8xf32>
    %73 = tpu.matmul %70, %72, %cst_33 {dimension_numbers = #tpu.dot_dimension_numbers<[1], [0], [0], [1], [0, 0, 1, 1], [], []>} : vector<64x3xbf16>, vector<3x8xbf16>, vector<64x8xf32> -> vector<64x8xf32>
    %74 = arith.addf %69, %73 : vector<64x8xf32>
    %75 = vector.extract_strided_slice %61 {offsets = [16, 0], sizes = [64, 3], strides = [1, 1]} : vector<80x3xbf16> to vector<64x3xbf16>
    %c6 = arith.constant 6 : index
    %c0_34 = arith.constant 0 : index
    %c0_35 = arith.constant 0 : index
    %76 = vector.load %arg5[%c6, %c0_34, %c0_35] : memref<9x3x8xbf16, #tpu.memory_space<vmem>>, vector<1x3x8xbf16>
    %77 = vector.shape_cast %76 : vector<1x3x8xbf16> to vector<3x8xbf16>
    %cst_36 = arith.constant dense<0.000000e+00> : vector<64x8xf32>
    %78 = tpu.matmul %75, %77, %cst_36 {dimension_numbers = #tpu.dot_dimension_numbers<[1], [0], [0], [1], [0, 0, 1, 1], [], []>} : vector<64x3xbf16>, vector<3x8xbf16>, vector<64x8xf32> -> vector<64x8xf32>
    %79 = arith.addf %74, %78 : vector<64x8xf32>
    %80 = vector.extract_strided_slice %62 {offsets = [0, 0], sizes = [64, 3], strides = [1, 1]} : vector<80x3xbf16> to vector<64x3xbf16>
    %c1 = arith.constant 1 : index
    %c0_37 = arith.constant 0 : index
    %c0_38 = arith.constant 0 : index
    %81 = vector.load %arg5[%c1, %c0_37, %c0_38] : memref<9x3x8xbf16, #tpu.memory_space<vmem>>, vector<1x3x8xbf16>
    %82 = vector.shape_cast %81 : vector<1x3x8xbf16> to vector<3x8xbf16>
    %cst_39 = arith.constant dense<0.000000e+00> : vector<64x8xf32>
    %83 = tpu.matmul %80, %82, %cst_39 {dimension_numbers = #tpu.dot_dimension_numbers<[1], [0], [0], [1], [0, 0, 1, 1], [], []>} : vector<64x3xbf16>, vector<3x8xbf16>, vector<64x8xf32> -> vector<64x8xf32>
    %84 = arith.addf %79, %83 : vector<64x8xf32>
    %85 = vector.extract_strided_slice %62 {offsets = [8, 0], sizes = [64, 3], strides = [1, 1]} : vector<80x3xbf16> to vector<64x3xbf16>
    %c4 = arith.constant 4 : index
    %c0_40 = arith.constant 0 : index
    %c0_41 = arith.constant 0 : index
    %86 = vector.load %arg5[%c4, %c0_40, %c0_41] : memref<9x3x8xbf16, #tpu.memory_space<vmem>>, vector<1x3x8xbf16>
    %87 = vector.shape_cast %86 : vector<1x3x8xbf16> to vector<3x8xbf16>
    %cst_42 = arith.constant dense<0.000000e+00> : vector<64x8xf32>
    %88 = tpu.matmul %85, %87, %cst_42 {dimension_numbers = #tpu.dot_dimension_numbers<[1], [0], [0], [1], [0, 0, 1, 1], [], []>} : vector<64x3xbf16>, vector<3x8xbf16>, vector<64x8xf32> -> vector<64x8xf32>
    %89 = arith.addf %84, %88 : vector<64x8xf32>
    %90 = vector.extract_strided_slice %62 {offsets = [16, 0], sizes = [64, 3], strides = [1, 1]} : vector<80x3xbf16> to vector<64x3xbf16>
    %c7_43 = arith.constant 7 : index
    %c0_44 = arith.constant 0 : index
    %c0_45 = arith.constant 0 : index
    %91 = vector.load %arg5[%c7_43, %c0_44, %c0_45] : memref<9x3x8xbf16, #tpu.memory_space<vmem>>, vector<1x3x8xbf16>
    %92 = vector.shape_cast %91 : vector<1x3x8xbf16> to vector<3x8xbf16>
    %cst_46 = arith.constant dense<0.000000e+00> : vector<64x8xf32>
    %93 = tpu.matmul %90, %92, %cst_46 {dimension_numbers = #tpu.dot_dimension_numbers<[1], [0], [0], [1], [0, 0, 1, 1], [], []>} : vector<64x3xbf16>, vector<3x8xbf16>, vector<64x8xf32> -> vector<64x8xf32>
    %94 = arith.addf %89, %93 : vector<64x8xf32>
    %95 = vector.extract_strided_slice %63 {offsets = [0, 0], sizes = [64, 3], strides = [1, 1]} : vector<80x3xbf16> to vector<64x3xbf16>
    %c2 = arith.constant 2 : index
    %c0_47 = arith.constant 0 : index
    %c0_48 = arith.constant 0 : index
    %96 = vector.load %arg5[%c2, %c0_47, %c0_48] : memref<9x3x8xbf16, #tpu.memory_space<vmem>>, vector<1x3x8xbf16>
    %97 = vector.shape_cast %96 : vector<1x3x8xbf16> to vector<3x8xbf16>
    %cst_49 = arith.constant dense<0.000000e+00> : vector<64x8xf32>
    %98 = tpu.matmul %95, %97, %cst_49 {dimension_numbers = #tpu.dot_dimension_numbers<[1], [0], [0], [1], [0, 0, 1, 1], [], []>} : vector<64x3xbf16>, vector<3x8xbf16>, vector<64x8xf32> -> vector<64x8xf32>
    %99 = arith.addf %94, %98 : vector<64x8xf32>
    %100 = vector.extract_strided_slice %63 {offsets = [8, 0], sizes = [64, 3], strides = [1, 1]} : vector<80x3xbf16> to vector<64x3xbf16>
    %c5 = arith.constant 5 : index
    %c0_50 = arith.constant 0 : index
    %c0_51 = arith.constant 0 : index
    %101 = vector.load %arg5[%c5, %c0_50, %c0_51] : memref<9x3x8xbf16, #tpu.memory_space<vmem>>, vector<1x3x8xbf16>
    %102 = vector.shape_cast %101 : vector<1x3x8xbf16> to vector<3x8xbf16>
    %cst_52 = arith.constant dense<0.000000e+00> : vector<64x8xf32>
    %103 = tpu.matmul %100, %102, %cst_52 {dimension_numbers = #tpu.dot_dimension_numbers<[1], [0], [0], [1], [0, 0, 1, 1], [], []>} : vector<64x3xbf16>, vector<3x8xbf16>, vector<64x8xf32> -> vector<64x8xf32>
    %104 = arith.addf %99, %103 : vector<64x8xf32>
    %105 = vector.extract_strided_slice %63 {offsets = [16, 0], sizes = [64, 3], strides = [1, 1]} : vector<80x3xbf16> to vector<64x3xbf16>
    %c8 = arith.constant 8 : index
    %c0_53 = arith.constant 0 : index
    %c0_54 = arith.constant 0 : index
    %106 = vector.load %arg5[%c8, %c0_53, %c0_54] : memref<9x3x8xbf16, #tpu.memory_space<vmem>>, vector<1x3x8xbf16>
    %107 = vector.shape_cast %106 : vector<1x3x8xbf16> to vector<3x8xbf16>
    %cst_55 = arith.constant dense<0.000000e+00> : vector<64x8xf32>
    %108 = tpu.matmul %105, %107, %cst_55 {dimension_numbers = #tpu.dot_dimension_numbers<[1], [0], [0], [1], [0, 0, 1, 1], [], []>} : vector<64x3xbf16>, vector<3x8xbf16>, vector<64x8xf32> -> vector<64x8xf32>
    %109 = arith.addf %104, %108 : vector<64x8xf32>
    %c0_56 = arith.constant 0 : index
    %c0_57 = arith.constant 0 : index
    %110 = vector.load %arg6[%c0_56, %c0_57] : memref<1x8xf32, #tpu.memory_space<vmem>>, vector<1x8xf32>
    %111 = vector.broadcast %110 : vector<1x8xf32> to vector<64x8xf32>
    %112 = arith.mulf %109, %111 : vector<64x8xf32>
    %c0_58 = arith.constant 0 : index
    %c0_59 = arith.constant 0 : index
    %113 = vector.load %arg7[%c0_58, %c0_59] : memref<1x8xf32, #tpu.memory_space<vmem>>, vector<1x8xf32>
    %114 = vector.broadcast %113 : vector<1x8xf32> to vector<64x8xf32>
    %115 = arith.addf %112, %114 : vector<64x8xf32>
    %116 = vector.shape_cast %115 : vector<64x8xf32> to vector<1x8x8x8xf32>
    %c0_60 = arith.constant 0 : index
    %c0_61 = arith.constant 0 : index
    %c0_62 = arith.constant 0 : index
    %c0_63 = arith.constant 0 : index
    %117 = vector.load %arg8[%c0_60, %c0_61, %c0_62, %c0_63] : memref<1x8x8x8xf32, #tpu.memory_space<vmem>>, vector<1x8x8x8xf32>
    tpu.vector_store %arg8[%c0_60, %c0_61, %c0_62, %c0_63], %116 {strides = array<i32>} : memref<1x8x8x8xf32, #tpu.memory_space<vmem>>, vector<1x8x8x8xf32>,
    return
  }
  func.func @transform_0(%arg0: i32, %arg1: i32) -> (i32, i32, i32, i32) {
    %c1_i32 = arith.constant 1 : i32
    %0 = arith.muli %arg1, %c1_i32 : i32
    %c1_i32_0 = arith.constant 1 : i32
    %1 = arith.subi %0, %c1_i32_0 : i32
    %c0_i32 = arith.constant 0 : i32
    %2 = arith.maxsi %1, %c0_i32 : i32
    %c0_i32_1 = arith.constant 0 : i32
    %c0_i32_2 = arith.constant 0 : i32
    %c0_i32_3 = arith.constant 0 : i32
    return %arg0, %2, %c0_i32_1, %c0_i32_2 : i32, i32, i32, i32
  }
  func.func @transform_1(%arg0: i32, %arg1: i32) -> (i32, i32, i32, i32) {
    %c0_i32 = arith.constant 0 : i32
    %c0_i32_0 = arith.constant 0 : i32
    %c0_i32_1 = arith.constant 0 : i32
    return %arg0, %arg1, %c0_i32, %c0_i32_0 : i32, i32, i32, i32
  }
  func.func @transform_2(%arg0: i32, %arg1: i32) -> (i32, i32, i32, i32) {
    %c1_i32 = arith.constant 1 : i32
    %0 = arith.addi %arg1, %c1_i32 : i32
    %c1_i32_0 = arith.constant 1 : i32
    %1 = arith.muli %0, %c1_i32_0 : i32
    %c0_i32 = arith.constant 0 : i32
    %2 = arith.minsi %1, %c0_i32 : i32
    %c0_i32_1 = arith.constant 0 : i32
    %c0_i32_2 = arith.constant 0 : i32
    %c0_i32_3 = arith.constant 0 : i32
    return %arg0, %2, %c0_i32_1, %c0_i32_2 : i32, i32, i32, i32
  }
  func.func @transform_3(%arg0: i32, %arg1: i32) -> (i32, i32, i32) {
    %c0_i32 = arith.constant 0 : i32
    %c0_i32_0 = arith.constant 0 : i32
    %c0_i32_1 = arith.constant 0 : i32
    %c0_i32_2 = arith.constant 0 : i32
    return %c0_i32, %c0_i32_0, %c0_i32_1 : i32, i32, i32
  }
  func.func @transform_4(%arg0: i32, %arg1: i32) -> (i32, i32) {
    %c0_i32 = arith.constant 0 : i32
    %c0_i32_0 = arith.constant 0 : i32
    %c0_i32_1 = arith.constant 0 : i32
    return %c0_i32, %c0_i32_0 : i32, i32
  }
  func.func @transform_5(%arg0: i32, %arg1: i32) -> (i32, i32) {
    %c0_i32 = arith.constant 0 : i32
    %c0_i32_0 = arith.constant 0 : i32
    %c0_i32_1 = arith.constant 0 : i32
    return %c0_i32, %c0_i32_0 : i32, i32
  }
  func.func @transform_6(%arg0: i32, %arg1: i32) -> (i32, i32, i32, i32) {
    %c0_i32 = arith.constant 0 : i32
    %c0_i32_0 = arith.constant 0 : i32
    %c0_i32_1 = arith.constant 0 : i32
    return %arg0, %arg1, %c0_i32, %c0_i32_0 : i32, i32, i32, i32
  }
}

</mosaic_0001>

<bundles_post_ra>
// kernel: tpu_custom_call.1
= control target key start
LH: loop header
LB: loop body
LE: loop exit
PB: predicated region body
PF: predicated region fallthrough
CT: control target
= control target key end

     0   :  { %11 = vsyncpa [#allocation3], 0  ;;  %s2590_s0 = inlined_call_operand.vmem [shape: f32[2,8,8,3], index: 0, kind: input, shape index: {}]   ;;  %s2591_s1 = inlined_call_operand.vmem [shape: f32[2,8,8,3], index: 1, kind: input, shape index: {}]   ;;  %s2592_s2 = inlined_call_operand.vmem [shape: f32[2,8,8,3], index: 2, kind: input, shape index: {}]   ;;  %s2593_s3 = inlined_call_operand.vmem [shape: bf16[9,3,8], index: 3, kind: input, shape index: {}]   ;;  %s2594_s4 = inlined_call_operand.vmem [shape: f32[1,8], index: 4, kind: input, shape index: {}]   ;;  %s2595_s5 = inlined_call_operand.vmem [shape: f32[1,8], index: 5, kind: input, shape index: {}]   ;;  %s2596_s6 = inlined_call_operand.hbm [shape: f32[2,8,8,8], index: 6, kind: output, shape index: {}]  }
   0x1   :  { %13 = vsyncpa [#allocation3 + $0x1], 0  ;;  %s2047_s0 = smov 0   ;;  %s2049_s21 = smov 0  }
   0x2   :  { %s2051_s22 = smov 0   ;;  %s2053_s2 = smov 0  }
   0x3   :  { %s2055_s23 = smov 0   ;;  %s2057_s24 = smov 0  }
   0x4 LB: > { %s1665_s25 = sadd.s32 4294967295, %s2005_s24   ;;  %s1666_s26 = sadd.s32 4294967294, %s2005_s24   ;;  %s2005_s24 = sphi %s2057_s24, %s19_s24   ;;  %s2001_s23 = sphi %s2055_s23, %s2621_s23   ;;  %s1997_s2 = sphi %s2053_s2, %s2620_s2   ;;  %s1993_s22 = sphi %s2051_s22, %s2619_s22   ;;  %s1989_s21 = sphi %s2049_s21, %s2618_s21   ;;  %s1985_s0 = sphi %s2047_s0, %s2617_s0  }
   0x5   : > { %s31_s27 = sadd.s32 1, %s2001_s23  ;;  %s199_s28 = sadd.s32 1, %s1993_s22 }
   0x6   : > { %p33_p0 = scmp.ge.s32.totalorder %s31_s27, 2  ;;  %p209_p1 = scmp.ne.s32.totalorder %s1993_s22, %s1989_s21 }
   0x7   : > { %p210_p2 = scmp.eq.s32.totalorder %s1665_s25, 1  ;;  %p215_p3 = scmp.ne.s32.totalorder %s1989_s21, %s1985_s0 }
   0x8   : > { %s2623_s27 = smov (%p33_p0, %s31_s27), 0  ;;  %p216_p5 = scmp.eq.s32.totalorder %s1666_s26, 1 }
   0x9   : > { %p2087_p4 = por %p210_p2, %p209_p1  ;;  %s194_s30 = ssub.s32 %s2001_s23, %s2623_s27 }
   0xa   : > { %p1669_p6 = scmp.ge.s32.totalorder %s2005_s24, 1  ;;  %p197_p7 = scmp.eq.s32.totalorder %s194_s30, 0 }
   0xb   : > { %p2094_p8 = por %p216_p5, %p215_p3  ;;  %p294_p9 = scmp.lt.s32.totalorder %s2005_s24, 3 }
   0xc   : > { %s2100_s8 = scalar_select %p197_p7, %s1993_s22, %s199_s28  }
   0xd   : > { %p295_p10 = pnand %p1669_p6, %p294_p9 }
   0xe   : > { %p369_p11 = scmp.lt.s32.totalorder (!%p295_p10), %s1997_s2, 1  ;;  %s1732_s28 = sshll.u32 (!%p295_p10), %s1997_s2, 10 }
   0xf   : > { %298 = sbr.rel (%p295_p10) target bundleno = 332 (0x14c), region = 44  ;;  %s2535_s11 = scalar_lea.hbm (!%p295_p10), %s2596_s6, %s1732_s28 }
  0x14   : > { %v1678_v0 = vld [vmem:[%s2593_s3 + $0x6] sm:$0x3]  ;;  %vm712_vm0 = vcmask 1040384   ;;  %vm713_vm1 = vcmask 1041408   ;;  %v413_v1 = vlaneseq  ;;  %v2007_v2 = vmov 65535   ;;  %s370_s13 = scalar_select %p369_p11, %s1997_s2, 1 }
  0x15   : > { %v714_v3 = vsel %vm712_vm0, 4294967295, %v2007_v2  ;;  %v681_v4 = vld [vmem:[%s2593_s3] sm:$0x3]  ;;  %v1687_v7 = vld [vmem:[%s2593_s3 + $0xc] sm:$0x3]  ;;  %v2008_v15 = vmov 0.0  }
  0x16   : > { %v2109_v5 = vsel %vm713_vm1, %v714_v3, 0  ;;  %v2112_v6 = vshrl.u32 %v413_v1, 7  ;;  %s1730_s16 = sshll.u32 %s370_s13, 6  ;;  %v2140_v16 = vrot.slane %v2008_v15, 7  ;;  %vm689_vm7 = vcmask 1043456   ;;  %s2009_s13 = smov [#allocation2]  }
  0x17   : > { %v717_v8 = vand.u32 %v1678_v0, %v2109_v5  ;;  %v2119_v9 = vand.u32 %v2109_v5, %v681_v4  ;;  %v2122_v10 = vand.u32 %v1687_v7, %v2109_v5  ;;  %s2137_s19 = scalar_lea.vmem %s2591_s1, %s1730_s16  ;;  %vm699_vm8 = vcmask 23552   ;;  %s349_s16 = sand.u32 1, %s1989_s21  }
  0x18   : > { %v2125_v11 = vadd.s32 8, %v2112_v6  ;;  %v2128_v12 = vadd.s32 16, %v2112_v6  ;;  %v2131_v13 = vadd.s32 24, %v2112_v6  ;;  %v428_v14 = vand.u32 7, %v2112_v6  ;;  %v2147_v18 = vld [vmem:[%s2137_s19] sm:$0xff]  ;;  %v2150_v19 = vld [vmem:[%s2137_s19 + $0x8] sm:$0xff] }
  0x19   : > { %1868 = vmatprep.subr.bf16.mxu1 %v717_v8  ;;  %1778 = vmatprep.subr.bf16.mxu0 %v717_v8  ;;  %vm574_vm2 = vcmp.lt.s32.totalorder %v2112_v6, 1  ;;  %v2144_v17 = vadd.s32 32, %v2112_v6  ;;  %v2153_v20 = vld [vmem:[%s2137_s19 + $0x10] sm:$0xff]  ;;  %v565_v25 = vrot.slane %v2147_v18, 7  ;;  %v566_v26 = vrot.slane %v2150_v19, 7  ;;  %v2186_v32 = vld [vmem:[%s2137_s19 + $0x18] sm:$0xff] }
  0x1a   : > { %1869 = vmatpush3.bf16.msra.mxu1 %v717_v8  ;;  %1779 = vmatpush3.bf16.msra.mxu0 %v717_v8  ;;  %v435_v21 = vand.u32 7, %v2125_v11  ;;  %v442_v22 = vand.u32 7, %v2128_v12  ;;  %v449_v23 = vand.u32 7, %v2131_v13  ;;  %vm2160_vm3 = vcmp.eq.s32.totalorder %v428_v14, 0  ;;  %v2196_v39 = vld [vmem:[%s2137_s19 + $0x20] sm:$0xff]  ;;  %v2199_v40 = vld [vmem:[%s2137_s19 + $0x28] sm:$0xff] }
  0x1b   : > { %v567_v27 = vrot.slane %v2153_v20, 7  ;;  %1788 = vmatprep.subr.bf16.mxu1 %v2119_v9  ;;  %1798 = vmatprep.subr.bf16.mxu0 %v2122_v10  ;;  %v2176_v28 = vadd.s32 40, %v2112_v6  ;;  %v582_v30 = vsel %vm574_vm2, %v565_v25, %v566_v26  ;;  %v583_v31 = vsel %vm574_vm2, %v2140_v16, %v565_v25  ;;  %v2212_v47 = vld [vmem:[%s2137_s19 + $0x30] sm:$0xff]  ;;  %v2249_v60 = vld [vmem:[%s2137_s19 + $0x38] sm:$0xff]  ;;  %s1670_s19 = sshll.u32 %s349_s16, 6  ;;  %s2545_s2 = scalar_lea.sflag [#allocation3], %s349_s16 }
  0x1c   : > { %vm545_vm4 = vcmp.eq.s32.totalorder %v435_v21, 0  ;;  %vm546_vm5 = vcmp.eq.s32.totalorder %v442_v22, 0  ;;  %vm547_vm6 = vcmp.eq.s32.totalorder %v449_v23, 0  ;;  %v605_v33 = vsel %vm2160_vm3, 0.0, %v2140_v16  ;;  %s2508_s26 = scalar_lea.vmem [#allocation2], %s1670_s19  ;;  %s1933_s14 = sshll.u32 %s2009_s13, 4  ;;  %s1934_s14 = int_to_ptr.vmem [resolvable:$false] %s1933_s14 }
  0x1d   : > { %v581_v29 = vsel %vm574_vm2, %v566_v26, %v567_v27  ;;  %v606_v34 = vsel %vm545_vm4, 0.0, %v583_v31  ;;  %v607_v35 = vsel %vm546_vm5, 0.0, %v582_v30  ;;  %v2202_v41 = vadd.s32 48, %v2112_v6  ;;  %v1697_v26 = vld [vmem:[%s2593_s3 + $0x8] sm:$0x3]  ;;  %s1550_s30 = sshll.u32 %s2508_s26, 4  ;;  %s2537_s30 = int_to_ptr.vmem [resolvable:$true] %s1550_s30 }
  0x1e   : > { %v608_v36 = vsel %vm547_vm6, 0.0, %v581_v29  ;;  %v2191_v37 = vpack.c.bf16 %v606_v34, %v605_v33  ;;  %v2205_v42 = vadd.s32 56, %v2112_v6  ;;  %v456_v43 = vand.u32 7, %v2144_v17  ;;  %s1929_s12 = scalar_lea.vmem %s2537_s30, 1024  ;;  %s1935_s15 = scalar_lea.vmem %s1934_s14, 2048 }
  0x1f   : > { %v2193_v38 = vpack.c.bf16 %v608_v36, %v607_v35  ;;  %v463_v44 = vand.u32 7, %v2176_v28  ;;  %v568_v48 = vrot.slane %v2186_v32, 7  ;;  %v470_v49 = vand.u32 7, %v2202_v41  ;;  %p1930_p12 = scmp.ne.s32.totalorder %s2537_s30, %s1929_s12  ;;  %p1936_p1 = scmp.lt.s32.totalorder %s2537_s30, %s1934_s14 }
  0x20   : > { %v690_v45 = vrot.slane %v2191_v37, 4  ;;  %v477_v50 = vand.u32 7, %v2205_v42  ;;  %vm2219_vm9 = vcmp.eq.s32.totalorder %v456_v43, 0  ;;  %v569_v54 = vrot.slane %v2196_v39, 7  ;;  %p1937_p2 = scmp.lt.s32.totalorder %s1935_s15, %s1929_s12 }
  0x21   : > { %v691_v46 = vrot.slane %v2193_v38, 4  ;;  %vm2226_vm10 = vcmp.eq.s32.totalorder %v463_v44, 0  ;;  %v570_v55 = vrot.slane %v2199_v40, 7  ;;  %vm2235_vm11 = vcmp.eq.s32.totalorder %v470_v49, 0  ;;  %p1931_p13 = pnand %p1930_p12, %p2087_p4 }
  0x22   : > { %vm2241_vm12 = vcmp.eq.s32.totalorder %v477_v50, 0  ;;  %v571_v58 = vrot.slane %v2212_v47, 7  ;;  %v580_v59 = vsel %vm574_vm2, %v567_v27, %v568_v48  ;;  %v579_v62 = vsel %vm574_vm2, %v568_v48, %v569_v54  ;;  %p1938_p3 = por %p1937_p2, %p1936_p1 }
  0x23   : > { %v692_v52 = vsel %vm689_vm7, %v690_v45, %v691_v46  ;;  %v578_v61 = vsel %vm574_vm2, %v569_v54, %v570_v55  ;;  %v609_v63 = vsel %vm2219_vm9, 0.0, %v580_v59  ;;  %v2258_v0 = vadd.s32 64, %v2112_v6  ;;  %v1707_v54 = vld [vmem:[%s2593_s3 + $0x4] sm:$0x3]  ;;  %p1932_p0 = pneg %p1931_p13 }
  0x24   : > { %1780 = vmatprep.mubr.msk.bf16.mxu0 %vm699_vm8, %v692_v52  ;;  %v577_v1 = vsel %vm574_vm2, %v570_v55, %v571_v58  ;;  %v610_v2 = vsel %vm2226_vm10, 0.0, %v579_v62  ;;  %v611_v3 = vsel %vm2235_vm11, 0.0, %v578_v61  ;;  %v2267_v4 = vadd.s32 72, %v2112_v6 }
  0x25   : > { %v612_v7 = vsel %vm2241_vm12, 0.0, %v577_v1  ;;  %v668_v8 = vpack.c.bf16 %v610_v2, %v609_v63  ;;  %v484_v24 = vand.u32 7, %v2258_v0  ;;  %v572_v25 = vrot.slane %v2249_v60, 7  ;;  %p1939_p5 = pnand %p1938_p3, %p1932_p0 }
  0x26   : > { %v669_v27 = vpack.c.bf16 %v612_v7, %v611_v3  ;;  %v491_v29 = vand.u32 7, %v2267_v4  ;;  %v1064_v36 = vand.u32 %v1697_v26, %v2109_v5  ;;  %v2310_v56 = vpack.c.bf16 %v2153_v20, %v2150_v19 }
  0x27   : > { %v693_v30 = vrot.slane %v668_v8, 4  ;;  %vm552_vm13 = vcmp.eq.s32.totalorder %v484_v24, 0  ;;  %v575_v31 = vsel %vm574_vm2, %v572_v25, %v2140_v16  ;;  %v576_v33 = vsel %vm574_vm2, %v571_v58, %v572_v25  ;;  %v1692_v16 = vld [vmem:[%s2593_s3 + $0x2] sm:$0x3]  ;;  %v1702_v58 = vld [vmem:[%s2593_s3 + $0xe] sm:$0x3] }
  0x28   : > { %v695_v34 = vrot.slane %v669_v27, 4  ;;  %vm553_vm14 = vcmp.eq.s32.totalorder %v491_v29, 0  ;;  %v613_v35 = vsel %vm552_vm13, 0.0, %v576_v33  ;;  %v1235_v57 = vand.u32 %v1707_v54, %v2109_v5 }
  0x29   : > { %v694_v45 = vsel %vm689_vm7, %v691_v46, %v693_v30  ;;  %v614_v48 = vsel %vm553_vm14, 0.0, %v575_v31  ;;  %v960_v46 = vand.u32 %v1692_v16, %v2109_v5  ;;  %v1145_v59 = vand.u32 %v1702_v58, %v2109_v5 }
  0x2a   : > { %v696_v51 = vsel %vm689_vm7, %v693_v30, %v695_v34  ;;  %1781 = vmatmul.mubr.msk.bf16.vlgmr.msra.gmra.mxu0 %vm699_vm8, %v694_v45  ;;  %v670_v52 = vpack.c.bf16 %v614_v48, %v613_v35  ;;  %v2324_v61 = vpack.c.bf16 %v2196_v39, %v2186_v32  ;;  %v2330_v63 = vpack.c.bf16 %v2212_v47, %v2199_v40 }
  0x2b   : > { %1784 = vmatprep.mubr.msk.bf16.mxu1 %vm699_vm8, %v696_v51  ;;  %1799 = vmatpush3.bf16.msra.mxu0 %v2122_v10  ;;  %v671_v10 = vpack.c.bf16 %v2147_v18, %v2008_v15  ;;  %v2337_v2 = vrot.slane %v2008_v15, 1  ;;  %v616_v3 = vrot.slane %v2147_v18, 1  ;;  %v617_v7 = vrot.slane %v2150_v19, 1 }
  0x2c   : > { %v697_v53 = vrot.slane %v670_v52, 4  ;;  %1800 = vmatprep.mubr.msk.bf16.mxu0 %vm699_vm8, %v2193_v38  ;;  %1818 = vmatprep.subr.bf16.mxu0 %v1064_v36  ;;  %v1047_v1 = vrot.slane %v2330_v63, 4  ;;  %vm625_vm15 = vcmp.lt.s32.totalorder %v2112_v6, 7  ;;  %v2349_v26 = vpack.c.bf16 %v2008_v15, %v2249_v60 }
  0x2d   : > { %vm2356_vm0 = vcmp.eq.s32.totalorder %v428_v14, 7  ;;  %vm2362_vm1 = vcmp.eq.s32.totalorder %v435_v21, 7  ;;  %v633_v15 = vsel %vm625_vm15, %v616_v3, %v617_v7  ;;  %v634_v31 = vsel %vm625_vm15, %v2337_v2, %v616_v3  ;;  %v1712_v14 = vld [vmem:[%s2593_s3 + $0xa] sm:$0x3] }
  0x2e   : > { %v698_v55 = vsel %vm689_vm7, %v695_v34, %v697_v53  ;;  %v1049_v11 = vrot.slane %v2349_v26, 4  ;;  %v618_v21 = vrot.slane %v2153_v20, 1  ;;  %v619_v33 = vrot.slane %v2186_v32, 1 }
  0x2f   : > { %1785 = vmatmul.mubr.msk.bf16.vlgmr.msra.gmra.mxu1 %vm699_vm8, %v698_v55  ;;  %v656_v34 = vsel %vm2356_vm0, 0.0, %v634_v31  ;;  %v657_v35 = vsel %vm2362_vm1, 0.0, %v633_v15  ;;  %v620_v45 = vrot.slane %v2196_v39, 1  ;;  %v621_v48 = vrot.slane %v2199_v40, 1 }
  0x30   : > { %1789 = vmatpush3.bf16.msra.mxu1 %v2119_v9  ;;  %1790 = vmatprep.mubr.msk.bf16.mxu1 %vm699_vm8, %v2191_v37  ;;  %v1042_v9 = vrot.slane %v671_v10, 4  ;;  %v1043_v37 = vrot.slane %v2310_v56, 4  ;;  %v1050_v20 = vsel %vm689_vm7, %v1047_v1, %v1049_v11  ;;  %v676_v51 = vpack.c.bf16 %v657_v35, %v656_v34 }
  0x31   : > { %1808 = vmatprep.subr.bf16.mxu1 %v960_v46  ;;  %vm2391_vm2 = vcmp.eq.s32.totalorder %v442_v22, 7  ;;  %vm2397_vm3 = vcmp.eq.s32.totalorder %v449_v23, 7  ;;  %v631_v39 = vsel %vm625_vm15, %v618_v21, %v619_v33  ;;  %v632_v12 = vsel %vm625_vm15, %v617_v7, %v618_v21 }
  0x32   : > { %1801 = vmatmul.mubr.msk.bf16.vlgmr.msra.gmra.mxu0 %vm699_vm8, %v668_v8  ;;  %v1044_v62 = vsel %vm689_vm7, %v1042_v9, %v1043_v37  ;;  %vm558_vm4 = vcmp.eq.s32.totalorder %v456_v43, 7  ;;  %vm559_vm5 = vcmp.eq.s32.totalorder %v463_v44, 7  ;;  %v629_v13 = vsel %vm625_vm15, %v620_v45, %v621_v48 }
  0x33   : > { %1819 = vmatpush3.bf16.msra.mxu0 %v1064_v36  ;;  %1804 = vmatprep.mubr.msk.bf16.mxu0 %vm699_vm8, %v669_v27  ;;  %v1339_v36 = vand.u32 %v1712_v14, %v2109_v5  ;;  %v630_v22 = vsel %vm625_vm15, %v619_v33, %v620_v45  ;;  %v659_v23 = vsel %vm2397_vm3, 0.0, %v631_v39  ;;  %v658_v17 = vsel %vm2391_vm2, 0.0, %v632_v12 }
  0x34   : > { %1838 = vmatprep.subr.bf16.mxu0 %v1235_v57  ;;  %v660_v40 = vsel %vm558_vm4, 0.0, %v630_v22  ;;  %v661_v43 = vsel %vm559_vm5, 0.0, %v629_v13  ;;  %v622_v28 = vrot.slane %v2212_v47, 1  ;;  %v623_v44 = vrot.slane %v2249_v60, 1 }
  0x35   : > { %v678_v16 = vpack.c.bf16 %v661_v43, %v660_v40  ;;  %vm560_vm6 = vcmp.eq.s32.totalorder %v470_v49, 7  ;;  %vm561_vm9 = vcmp.eq.s32.totalorder %v477_v50, 7  ;;  %v1317_v41 = vrot.slane %v676_v51, 4 }
  0x36   : > { %v627_v53 = vsel %vm625_vm15, %v622_v28, %v623_v44  ;;  %v628_v47 = vsel %vm625_vm15, %v621_v48, %v622_v28  ;;  %vm562_vm10 = vcmp.eq.s32.totalorder %v484_v24, 7  ;;  %vm563_vm11 = vcmp.eq.s32.totalorder %v491_v29, 7 }
  0x37   : > { %1791 = vmatmul.mubr.msk.bf16.vlgmr.msra.gmra.mxu1 %vm699_vm8, %v2193_v38  ;;  %v1045_v38 = vrot.slane %v2324_v61, 4  ;;  %v662_v60 = vsel %vm560_vm6, 0.0, %v628_v47  ;;  %v626_v50 = vsel %vm625_vm15, %v623_v44, %v2337_v2  ;;  %v1320_v55 = vrot.slane %v678_v16, 4 }
  0x38   : > { %1809 = vmatpush3.bf16.msra.mxu1 %v960_v46  ;;  %1794 = vmatprep.mubr.msk.bf16.mxu1 %vm699_vm8, %v668_v8  ;;  %v1717_v8 = vld [vmem:[%s2593_s3 + $0x10] sm:$0x3]  ;;  %v663_v46 = vsel %vm561_vm9, 0.0, %v627_v53 }
  0x39   : > { %1828 = vmatprep.subr.bf16.mxu1 %v1145_v59  ;;  %v1046_v25 = vsel %vm689_vm7, %v1043_v37, %v1045_v38  ;;  %v1048_v18 = vsel %vm689_vm7, %v1045_v38, %v1047_v1  ;;  %v1420_v19 = vand.u32 %v1717_v8, %v2109_v5  ;;  %v679_v54 = vpack.c.bf16 %v663_v46, %v662_v60 }
  0x3a   : > { %1805 = vmatmul.mubr.msk.bf16.gmra.mxu0 %vm699_vm8, %v670_v52  ;;  %v677_v52 = vpack.c.bf16 %v659_v23, %v658_v17 }
  0x3b   : > { %1820 = vmatprep.mubr.msk.bf16.mxu0 %vm699_vm8, %v1044_v62 }
  0x3c   : > { %v1318_v42 = vrot.slane %v677_v52, 4 }
  0x3e   : > { %v1319_v49 = vsel %vm689_vm7, %v1317_v41, %v1318_v42  ;;  %v1321_v0 = vsel %vm689_vm7, %v1318_v42, %v1320_v55 }
  0x3f   : > { %1795 = vmatmul.mubr.msk.bf16.gmra.mxu1 %vm699_vm8, %v669_v27 }
  0x40   : > { %1810 = vmatprep.mubr.msk.bf16.mxu1 %vm699_vm8, %v671_v10  ;;  %v1322_v10 = vrot.slane %v679_v54, 4 }
  0x42   : > { %1821 = vmatmul.mubr.msk.bf16.vlgmr.msra.gmra.mxu0 %vm699_vm8, %v1046_v25  ;;  %v1323_v6 = vsel %vm689_vm7, %v1320_v55, %v1322_v10 }
  0x43   : > { %1839 = vmatpush3.bf16.msra.mxu0 %v1235_v57  ;;  %1824 = vmatprep.mubr.msk.bf16.mxu0 %vm699_vm8, %v1048_v18  ;;  %v665_v57 = vsel %vm563_vm11, 0.0, %v2337_v2 }
  0x44   : > { %1858 = vmatprep.subr.bf16.mxu0 %v1420_v19 }
  0x47   : > { %1811 = vmatmul.mubr.msk.bf16.vlgmr.msra.gmra.mxu1 %vm699_vm8, %v2310_v56 }
  0x48   : > { %1829 = vmatpush3.bf16.msra.mxu1 %v1145_v59  ;;  %1814 = vmatprep.mubr.msk.bf16.mxu1 %vm699_vm8, %v2324_v61 }
  0x49   : > { %1848 = vmatprep.subr.bf16.mxu1 %v1339_v36 }
  0x4a   : > { %1825 = vmatmul.mubr.msk.bf16.gmra.mxu0 %vm699_vm8, %v1050_v20 }
  0x4b   : > { %1840 = vmatprep.mubr.msk.bf16.mxu0 %vm699_vm8, %v676_v51 }
  0x4f   : > { %1815 = vmatmul.mubr.msk.bf16.gmra.mxu1 %vm699_vm8, %v2330_v63 }
  0x50   : > { %1830 = vmatprep.mubr.msk.bf16.mxu1 %vm699_vm8, %v2310_v56  ;;  %v664_v56 = vsel %vm562_vm10, 0.0, %v626_v50 }
  0x51   : > { %v680_v4 = vpack.c.bf16 %v665_v57, %v664_v56 }
  0x52   : > { %1841 = vmatmul.mubr.msk.bf16.vlgmr.msra.gmra.mxu0 %vm699_vm8, %v677_v52 }
  0x53   : > { %1859 = vmatpush3.bf16.msra.mxu0 %v1420_v19  ;;  %1844 = vmatprep.mubr.msk.bf16.mxu0 %vm699_vm8, %v678_v16  ;;  %v1324_v24 = vrot.slane %v680_v4, 4 }
  0x55   : > { %v1325_v29 = vsel %vm689_vm7, %v1322_v10, %v1324_v24  ;;  %vm1525_vm7 = vcmask 64512  }
  0x57   : > { %1831 = vmatmul.mubr.msk.bf16.vlgmr.msra.gmra.mxu1 %vm699_vm8, %v2324_v61 }
  0x58   : > { %1849 = vmatpush3.bf16.msra.mxu1 %v1339_v36  ;;  %1834 = vmatprep.mubr.msk.bf16.mxu1 %vm699_vm8, %v2330_v63 }
  0x5a   : > { %1845 = vmatmul.mubr.msk.bf16.gmra.mxu0 %vm699_vm8, %v679_v54 }
  0x5b   : > { %1860 = vmatprep.mubr.msk.bf16.mxu0 %vm699_vm8, %v677_v52 }
  0x5f   : > { %1835 = vmatmul.mubr.msk.bf16.gmra.mxu1 %vm699_vm8, %v2349_v26 }
  0x60   : > { %1850 = vmatprep.mubr.msk.bf16.mxu1 %vm699_vm8, %v1319_v49 }
  0x62   : > { %1861 = vmatmul.mubr.msk.bf16.vlgmr.msra.gmra.mxu0 %vm699_vm8, %v678_v16 }
  0x63   : > { %1864 = vmatprep.mubr.msk.bf16.mxu0 %vm699_vm8, %v679_v54 }
  0x67   : > { %1851 = vmatmul.mubr.msk.bf16.vlgmr.msra.gmra.mxu1 %vm699_vm8, %v1321_v0 }
  0x68   : > { %1854 = vmatprep.mubr.msk.bf16.mxu1 %vm699_vm8, %v1323_v6 }
  0x6a   : > { %1865 = vmatmul.mubr.msk.bf16.gmra.mxu0 %vm699_vm8, %v680_v4 }
  0x6f   : > { %1855 = vmatmul.mubr.msk.bf16.gmra.mxu1 %vm699_vm8, %v1325_v29 }
  0xea   : > { %v1782_v58 = vpop.f32.mrf.mxu0 }
  0xec   : > { %v753_v9 = vpop.f32.mrf.mxu0 }
  0xee   : > { %v1783_v37 = vpop.f32.mrf.mxu0 }
  0xef   : > { %v1786_v59 = vpop.f32.mrf.mxu1 }
  0xf0   : > { %v756_v61 = vpop.f32.mrf.mxu0 }
  0xf1   : > { %v769_v62 = vpop.f32.mrf.mxu1 }
  0xf2   : > { %v1802_v63 = vpop.f32.mrf.mxu0 }
  0xf3   : > { %v1787_v38 = vpop.f32.mrf.mxu1 }
  0xf4   : > { %v906_v1 = vpop.f32.mrf.mxu0 }
  0xf5   : > { %v2464_v2 = vpop.f32.mrf.mxu1 }
  0xf6   : > { %v1803_v3 = vpop.f32.mrf.mxu0 }
  0xf7   : > { %v1792_v7 = vpop.f32.mrf.mxu1 }
  0xf8   : > { %v909_v8 = vpop.f32.mrf.mxu0  ;;  %v842_v28 = vadd.f32 %v1792_v7, %v1782_v58 }
  0xf9   : > { %v833_v25 = vpop.f32.mrf.mxu1 }
  0xfa   : > { %v1806_v26 = vpop.f32.mrf.mxu0  ;;  %v834_v16 = vadd.f32 %v833_v25, %v753_v9  ;;  %v939_v60 = vadd.f32 %v1802_v63, %v842_v28 }
  0xfb   : > { %v1793_v18 = vpop.f32.mrf.mxu1 }
  0xfc   : > { %v922_v19 = vpop.f32.mrf.mxu0  ;;  %v845_v46 = vadd.f32 %v1793_v18, %v1783_v37  ;;  %v937_v42 = vadd.f32 %v906_v1, %v834_v16 }
  0xfd   : > { %v836_v30 = vpop.f32.mrf.mxu1 }
  0xfe   : > { %v2466_v27 = vpop.f32.mrf.mxu0  ;;  %v837_v49 = vadd.f32 %v836_v30, %v756_v61  ;;  %v940_v57 = vadd.f32 %v1803_v3, %v845_v46 }
  0xff   : > { %v1796_v15 = vpop.f32.mrf.mxu1 }
 0x100   : > { %v2468_v31 = vpop.f32.mrf.mxu0  ;;  %v858_v10 = vadd.f32 %v1796_v15, %v1786_v59  ;;  %v938_v29 = vadd.f32 %v909_v8, %v837_v49 }
 0x101   : > { %v849_v14 = vpop.f32.mrf.mxu1 }
 0x102   : > { %v1822_v11 = vpop.f32.mrf.mxu0  ;;  %v850_v6 = vadd.f32 %v849_v14, %v769_v62  ;;  %v943_v63 = vadd.f32 %v1806_v26, %v858_v10 }
 0x103   : > { %v1797_v21 = vpop.f32.mrf.mxu1 }
 0x104   : > { %v1100_v33 = vpop.f32.mrf.mxu0  ;;  %v861_v7 = vadd.f32 %v1797_v21, %v1787_v38  ;;  %v941_v59 = vadd.f32 %v922_v19, %v850_v6 }
 0x105   : > { %v852_v34 = vpop.f32.mrf.mxu1 }
 0x106   : > { %v1823_v35 = vpop.f32.mrf.mxu0  ;;  %v853_v3 = vadd.f32 %v852_v34, %v2464_v2 }
 0x107   : > { %v1812_v36 = vpop.f32.mrf.mxu1 }
 0x108   : > { %v1103_v45 = vpop.f32.mrf.mxu0  ;;  %v1029_v50 = vadd.f32 %v1812_v36, %v939_v60 }
 0x109   : > { %v996_v48 = vpop.f32.mrf.mxu1 }
 0x10a   : > { %v1826_v20 = vpop.f32.mrf.mxu0  ;;  %v1027_v0 = vadd.f32 %v996_v48, %v937_v42  ;;  %v1133_v58 = vadd.f32 %v1822_v11, %v1029_v50  ;;  %v944_v11 = vadd.f32 %v2466_v27, %v861_v7 }
 0x10b   : > { %v1813_v51 = vpop.f32.mrf.mxu1 }
 0x10c   : > { %v2470_v32 = vpop.f32.mrf.mxu0  ;;  %v1030_v9 = vadd.f32 %v1813_v51, %v940_v57  ;;  %v1131_v61 = vadd.f32 %v1100_v33, %v1027_v0 }
 0x10d   : > { %v999_v5 = vpop.f32.mrf.mxu1 }
 0x10e   : > { %v2472_v39 = vpop.f32.mrf.mxu0  ;;  %v1028_v25 = vadd.f32 %v999_v5, %v938_v29  ;;  %v1134_v62 = vadd.f32 %v1823_v35, %v1030_v9  ;;  %v942_v5 = vadd.f32 %v2468_v31, %v853_v3 }
 0x10f   : > { %v1816_v12 = vpop.f32.mrf.mxu1 }
 0x110   : > { %v2474_v13 = vpop.f32.mrf.mxu0  ;;  %v1033_v15 = vadd.f32 %v1816_v12, %v943_v63  ;;  %v1132_v26 = vadd.f32 %v1103_v45, %v1028_v25  ;;  %v2494_v45 = vld [vmem:[%s2594_s4] ss:$0 sm:$0xff] }
 0x111   : > { %v1012_v22 = vpop.f32.mrf.mxu1 }
 0x112   : > { %v1842_v23 = vpop.f32.mrf.mxu0  ;;  %v1031_v48 = vadd.f32 %v1012_v22, %v941_v59  ;;  %v1137_v19 = vadd.f32 %v1826_v20, %v1033_v15 }
 0x113   : > { %v1817_v17 = vpop.f32.mrf.mxu1 }
 0x114   : > { %v1271_v40 = vpop.f32.mrf.mxu0  ;;  %v1034_v28 = vadd.f32 %v1817_v17, %v944_v11  ;;  %v1135_v16 = vadd.f32 %v2470_v32, %v1031_v48  ;;  %v1723_v32 = vld [vmem:[%s2595_s5] ss:$0 sm:$0xff] }
 0x115   : > { %v1015_v43 = vpop.f32.mrf.mxu1 }
 0x116   : > { %v1843_v44 = vpop.f32.mrf.mxu0  ;;  %v1032_v27 = vadd.f32 %v1015_v43, %v942_v5  ;;  %v1138_v17 = vadd.f32 %v2472_v39, %v1034_v28 }
 0x117   : > { %v1832_v52 = vpop.f32.mrf.mxu1 }
 0x118   : > { %v2476_v53 = vpop.f32.mrf.mxu0  ;;  %v1214_v18 = vadd.f32 %v1832_v52, %v1133_v58 }
 0x119   : > { %v1181_v47 = vpop.f32.mrf.mxu1 }
 0x11a   : > { %v2478_v54 = vpop.f32.mrf.mxu0  ;;  %v1212_v14 = vadd.f32 %v1181_v47, %v1131_v61  ;;  %v1304_v38 = vadd.f32 %v1842_v23, %v1214_v18 }
 0x11b   : > { %v1833_v41 = vpop.f32.mrf.mxu1 }
 0x11c   : > { %v2480_v55 = vpop.f32.mrf.mxu0  ;;  %v1215_v21 = vadd.f32 %v1833_v41, %v1134_v62  ;;  %v1302_v34 = vadd.f32 %v1271_v40, %v1212_v14 }
 0x11d   : > { %v1184_v56 = vpop.f32.mrf.mxu1 }
 0x11e   : > { %v2482_v4 = vpop.f32.mrf.mxu0  ;;  %v1213_v12 = vadd.f32 %v1184_v56, %v1132_v26  ;;  %v1305_v47 = vadd.f32 %v1843_v44, %v1215_v21  ;;  %v1136_v44 = vadd.f32 %v2474_v13, %v1032_v27 }
 0x11f   : > { %v1836_v24 = vpop.f32.mrf.mxu1 }
 0x120   : > { %v2484_v37 = vpop.f32.mrf.mxu0  ;;  %v1218_v22 = vadd.f32 %v1836_v24, %v1137_v19  ;;  %v1303_v46 = vadd.f32 %v2476_v53, %v1213_v12 }
 0x121   : > { %v1197_v1 = vpop.f32.mrf.mxu1 }
 0x122   : > { %v1862_v30 = vpop.f32.mrf.mxu0  ;;  %v1216_v40 = vadd.f32 %v1197_v1, %v1135_v16  ;;  %v1308_v50 = vadd.f32 %v2478_v54, %v1218_v22 }
 0x123   : > { %v1837_v36 = vpop.f32.mrf.mxu1 }
 0x124   : > { %v1456_v8 = vpop.f32.mrf.mxu0  ;;  %v1219_v10 = vadd.f32 %v1837_v36, %v1138_v17  ;;  %v1306_v24 = vadd.f32 %v2480_v55, %v1216_v40 }
 0x125   : > { %v1200_v51 = vpop.f32.mrf.mxu1 }
 0x126   : > { %v1863_v33 = vpop.f32.mrf.mxu0  ;;  %v1217_v29 = vadd.f32 %v1200_v51, %v1136_v44  ;;  %v1309_v7 = vadd.f32 %v2482_v4, %v1219_v10 }
 0x127   : > { %v1852_v2 = vpop.f32.mrf.mxu1 }
 0x128   : > { %v1408_v35 = vadd.f32 %v1852_v2, %v1304_v38  ;;  %v1459_v52 = vpop.f32.mrf.mxu0 }
 0x129   : > { %v1375_v23 = vpop.f32.mrf.mxu1 }
 0x12a   : > { %v1489_v31 = vadd.f32 %v1862_v30, %v1408_v35  ;;  %v1406_v20 = vadd.f32 %v1375_v23, %v1302_v34  ;;  %v1866_v60 = vpop.f32.mrf.mxu0  ;;  %v1307_v30 = vadd.f32 %v2484_v37, %v1217_v29 }
 0x12b   : > { %v1853_v43 = vpop.f32.mrf.mxu1 }
 0x12c   : > { %v1504_v41 = vmul.f32 %v2494_v45, %v1489_v31  ;;  %v1487_v42 = vadd.f32 %v1456_v8, %v1406_v20  ;;  %v1409_v49 = vadd.f32 %v1853_v43, %v1305_v47  ;;  %v1472_v58 = vpop.f32.mrf.mxu0 }
 0x12d   : > { %v1378_v39 = vpop.f32.mrf.mxu1 }
 0x12e   : > { %v1519_v56 = vadd.f32 %v1723_v32, %v1504_v41  ;;  %v1502_v57 = vmul.f32 %v2494_v45, %v1487_v42  ;;  %v1490_v0 = vadd.f32 %v1863_v33, %v1409_v49  ;;  %v1407_v6 = vadd.f32 %v1378_v39, %v1303_v46  ;;  %v1867_v3 = vpop.f32.mrf.mxu0 }
 0x12f   : > { %v1856_v53 = vpop.f32.mrf.mxu1 }
 0x130   : > { %1528 = vst.msk [vmem:[%s2508_s26 + $0x10] sm:$0xff] %vm1525_vm7, %v1519_v56  ;;  %v1517_v13 = vadd.f32 %v1723_v32, %v1502_v57  ;;  %v1505_v54 = vmul.f32 %v2494_v45, %v1490_v0  ;;  %v1488_v9 = vadd.f32 %v1459_v52, %v1407_v6  ;;  %v1412_v63 = vadd.f32 %v1856_v53, %v1308_v50  ;;  %v1475_v51 = vpop.f32.mrf.mxu0 }
 0x131   : > { %v1391_v1 = vpop.f32.mrf.mxu1 }
 0x132   : > { %1526 = vst.msk [vmem:[%s2508_s26] sm:$0xff] %vm1525_vm7, %v1517_v13  ;;  %v1520_v55 = vadd.f32 %v1723_v32, %v1505_v54  ;;  %v1503_v61 = vmul.f32 %v2494_v45, %v1488_v9  ;;  %v1493_v25 = vadd.f32 %v1866_v60, %v1412_v63  ;;  %v1410_v18 = vadd.f32 %v1391_v1, %v1306_v24 }
 0x133   : > { %v1857_v59 = vpop.f32.mrf.mxu1 }
 0x134   : > { %1529 = vst.msk [vmem:[%s2508_s26 + $0x18] sm:$0xff] %vm1525_vm7, %v1520_v55  ;;  %v1518_v15 = vadd.f32 %v1723_v32, %v1503_v61  ;;  %v1508_v4 = vmul.f32 %v2494_v45, %v1493_v25  ;;  %v1491_v36 = vadd.f32 %v1472_v58, %v1410_v18  ;;  %v1413_v62 = vadd.f32 %v1857_v59, %v1309_v7 }
 0x135   : > { %v1394_v14 = vpop.f32.mrf.mxu1 }
 0x136   : > { %1527 = vst.msk [vmem:[%s2508_s26 + $0x8] sm:$0xff] %vm1525_vm7, %v1518_v15  ;;  %v1523_v8 = vadd.f32 %v1723_v32, %v1508_v4  ;;  %v1506_v11 = vmul.f32 %v2494_v45, %v1491_v36  ;;  %v1494_v37 = vadd.f32 %v1867_v3, %v1413_v62  ;;  %v1411_v48 = vadd.f32 %v1394_v14, %v1307_v30 }
 0x138   : > { %1532 = vst.msk [vmem:[%s2508_s26 + $0x30] sm:$0xff] %vm1525_vm7, %v1523_v8  ;;  %v1521_v26 = vadd.f32 %v1723_v32, %v1506_v11  ;;  %v1509_v38 = vmul.f32 %v2494_v45, %v1494_v37  ;;  %v1492_v21 = vadd.f32 %v1475_v51, %v1411_v48 }
 0x13a   : > { %1530 = vst.msk [vmem:[%s2508_s26 + $0x20] sm:$0xff] %vm1525_vm7, %v1521_v26  ;;  %v1524_v33 = vadd.f32 %v1723_v32, %v1509_v38  ;;  %v1507_v5 = vmul.f32 %v2494_v45, %v1492_v21 }
 0x13c   : > { %1533 = vst.msk [vmem:[%s2508_s26 + $0x38] sm:$0xff] %vm1525_vm7, %v1524_v33  ;;  %v1522_v19 = vadd.f32 %v1723_v32, %v1507_v5 }
 0x13e   : > { %1531 = vst.msk [vmem:[%s2508_s26 + $0x28] sm:$0xff] %vm1525_vm7, %v1522_v19 }
 0x13f   : > { %1942 = shalt.err (!%p1939_p5)
}
 0x140   : > { %s1943_s16 = scalar_lea.hbm %s2535_s11, 1024  ;;  %s1947_s19 = scalar_lea.hbm %s2596_s6, 2048 }
 0x141   : > { %p1944_p6 = scmp.ne.s32.totalorder %s2535_s11, %s1943_s16  ;;  %p1948_p10 = scmp.lt.s32.totalorder %s2535_s11, %s2596_s6 }
 0x142   : > { %p1949_p11 = scmp.lt.s32.totalorder %s1947_s19, %s1943_s16 }
 0x143   : > { %p1945_p7 = pnand %p1944_p6, %p2087_p4 }
 0x144   : > { %p1950_p12 = por %p1949_p11, %p1948_p10 }
 0x145   : > { %p1946_p9 = pneg %p1945_p7 }
 0x147   : > { %p1951_p13 = pnand %p1950_p12, %p1946_p9 }
 0x149   : > { %1954 = shalt.err (!%p1951_p13)
}
 0x14a   : > { %s2010_s26 = smov 128   ;;  %s2011_s28 = smov 8  }
 0x14b   : > { %1870 = dma.vmem_to_hbm [thread:$0]  (%p2087_p4), %s2537_s30, 1024, %s2535_s11, %s2545_s2, %s2010_s26, %s2010_s26, %s2011_s28  }
 0x14c PF: > { %p1876_p0 = scmp.ge.s32.totalorder %s2005_s24, 2  ;;  %s1565_s9 = sand.u32 1, %s1985_s0  }
 0x14d   : > { %s1566_s10 = scalar_lea.sflag [#allocation3], %s1565_s9 }
 0x14e   : > { %p1873_p1 = pnand %p1876_p0, %p2094_p8 }
 0x150   : > { %p1874_p2 = pneg %p1873_p1 }
 0x152   : > { %1980 = dma.done.wait (%p1874_p2), %s1566_s10, 1024  }
 0x153   : > { %1982 = vsyncadd (%p1874_p2), %s1566_s10, 4294966272  ;;  %s19_s24 = sadd.s32 1, %s2005_s24   ;;  %s2617_s0 = smov %s1989_s21 }
 0x154   : > { %p16_p3 = scmp.ge.s32.totalorder %s19_s24, 4   ;;  %s2618_s21 = smov %s1993_s22 }
 0x155   : > { %s2619_s22 = smov %s2100_s8  ;;  %s2620_s2 = smov %s2001_s23 }
 0x156   : > { %s2621_s23 = smov %s2623_s27  ;;  %18 = sbr.rel (!%p16_p3) target bundleno = 4 (0x4), region = 94 }
 0x15b   :  { %1571 = vsyncpa [#allocation3], 1 }
 0x15c   :  { %1573 = vsyncpa [#allocation3 + $0x1], 1 }

</bundles_post_ra>
